<compile_context>
chip_gen: v6e
topology: v6e:2x2x1
jax: 0.10.0
libtpu: 0.0.40
codegen_flags: <defaults>
</compile_context>

<pallas_src>
import jax
import jax.numpy as jnp
from jax.experimental import pallas as pl
from jax.experimental.pallas import tpu as pltpu


# ----------------------------- Pallas kernel -------------------------------

def _distmult_kernel(src_ref, rel_ref, ent_t_ref, out_ref):
    # src_ref, rel_ref: [TB, D] f32 gathered embeddings (resident across n)
    # ent_t_ref:        [D, TN] bf16 entity-table tile (streamed)
    # out_ref:          [TB, TN] f32 scores tile
    h = src_ref[...] * rel_ref[...]                         # f32 VPU (v5e-safe)
    out_ref[...] = jnp.dot(h.astype(ent_t_ref.dtype), ent_t_ref[...],
                           preferred_element_type=jnp.float32)  # bf16 MXU, f32 acc


# --------------------------- tile-size derivation ---------------------------

def _round_up(x, m):
    return ((x + m - 1) // m) * m


def _round_down(x, m):
    return (x // m) * m


def _vmem_limit_bytes():
    """Generation-aware scoped-VMEM limit: half of physical, capped at 64 MiB.

    v5e/v6e (128 MiB physical) -> 64 MiB;  v7x (64 MiB per TC) -> 32 MiB.
    Conservative 32 MiB fallback if the hardware query is unavailable.
    """
    try:
        cap = int(pltpu.get_tpu_info().vmem_capacity_bytes)
        return max(32 * 1024 * 1024, min(cap // 2, 64 * 1024 * 1024))
    except Exception:
        return 32 * 1024 * 1024


def distmult_all_entity_scores(src_emb, rel_emb, ent_table_t):
    """src_emb, rel_emb: [B, D] f32; ent_table_t: [D, N] bf16 -> [B, N] f32."""
    B, D = src_emb.shape
    D2, N = ent_table_t.shape
    assert D == D2

    vmem_limit = _vmem_limit_bytes()
    budget = int(vmem_limit * 3 // 4)          # headroom for compiler scratch

    # --- Batch tile: keep the whole batch resident if possible (every extra
    # b-tile re-streams the entire N*D entity table from HBM).  src/rel f32
    # blocks are double-buffered by the pipeline: 2 arrays x 2 bufs x TB*D*4,
    # kept under budget/4 so the streamed-tile budget stays dominant.
    tb_cap = min(512, max(8, (budget // 4) // (4 * D * 4)))
    tb_cap = max(8, _round_down(tb_cap, 8))
    TB = B if B <= tb_cap else tb_cap

    # --- Entity tile: target a >= ~1 MiB streamed bf16 tile (so DMA + compute
    # dwarf the ~0.35 us per-grid-step overhead), subject to the VMEM budget:
    #   2*(D*TN*2)   double-buffered bf16 table tile
    # + 2*(TB*TN*4)  double-buffered f32 output tile
    # + 4*(TB*D*4)   resident (double-buffered) src/rel blocks   <= budget
    resident = 4 * TB * D * 4
    per_tn_bytes = 2 * (2 * D) + 2 * (4 * TB)
    tn_cap = max(128, _round_down((budget - resident) // per_tn_bytes, 128))
    tn_target = _round_up(max(512, (1 << 20) // (2 * D)), 128)
    tn_pick = min(tn_target, tn_cap)
    TN = N if N <= tn_pick else tn_pick        # full axis or 128-multiple tile

    grid = (pl.cdiv(B, TB), pl.cdiv(N, TN))

    return pl.pallas_call(
        _distmult_kernel,
        out_shape=jax.ShapeDtypeStruct((B, N), jnp.float32),
        grid_spec=pltpu.PrefetchScalarGridSpec(
            num_scalar_prefetch=0,
            grid=grid,
            in_specs=[
                pl.BlockSpec((TB, D), lambda b, n: (b, 0)),   # resident over n
                pl.BlockSpec((TB, D), lambda b, n: (b, 0)),   # resident over n
                pl.BlockSpec((D, TN), lambda b, n: (0, n)),   # streamed table
            ],
            out_specs=pl.BlockSpec((TB, TN), lambda b, n: (b, n)),
        ),
        compiler_params=pltpu.CompilerParams(
            # Entity axis is the megacore-parallel one on v7x: each core then
            # streams half the table instead of both streaming all of it.
            dimension_semantics=("arbitrary", "parallel"),
            vmem_limit_bytes=vmem_limit,
        ),
    )(src_emb, rel_emb, ent_table_t)


# --------------------------- jitted score paths ----------------------------
# Weights are traced arguments (not jit constants): no compile-time table
# folding, no recompilation per model instance, updates are reflected.

@jax.jit
def _all_scores(ent_t, rel_emb, src, rel):
    # Row gathers are tiny glue; the hot path (streaming the full table) is
    # the Pallas kernel.
    # TODO(synk): for very large batches, fuse the src gather into the kernel
    # via scalar-prefetched ids instead of a strided column gather here.
    src_e = jnp.take(ent_t, src, axis=1).T.astype(jnp.float32)    # [B, D]
    rel_e = jnp.take(rel_emb, rel, axis=0).astype(jnp.float32)    # [B, D]
    return distmult_all_entity_scores(src_e, rel_e, ent_t)


@jax.jit
def _candidate_scores(ent_t, rel_emb, src, rel, candidate):
    # Score only the C candidates: work/HBM traffic drops by N/C versus
    # computing full scores and gathering columns afterwards.
    src_e = jnp.take(ent_t, src, axis=1).T.astype(jnp.float32)    # [B, D]
    rel_e = jnp.take(rel_emb, rel, axis=0).astype(jnp.float32)    # [B, D]
    h = src_e * rel_e                                             # [B, D]
    cand_e = jnp.take(ent_t, candidate, axis=1)                   # [D, B, C]
    return jnp.einsum('bd,dbc->bc', h, cand_e.astype(jnp.float32))


# ------------------------------ Model wrapper ------------------------------

class JuniorModelPallas:
    """JAX/Pallas equivalent of JuniorModel with a DistMult_Function head."""

    def __init__(self, entity_num, relation_num, embedding_dim, key):
        k1, k2 = jax.random.split(key)
        # xavier_uniform-style deterministic init (synthetic; no checkpoint).
        limit_e = (6.0 / (entity_num + embedding_dim)) ** 0.5
        limit_r = (6.0 / (relation_num + embedding_dim)) ** 0.5
        ent = jax.random.uniform(
            k1, (entity_num, embedding_dim), jnp.float32, -limit_e, limit_e)
        # Single copy of the entity table: transposed [D, N], bf16 (lane-dense
        # along entities for the kernel; half the HBM bytes to stream).
        self.entity_emb_t = jnp.asarray(ent.T, dtype=jnp.bfloat16)    # [D, N]
        self.relation_emb = jax.random.uniform(
            k2, (relation_num, embedding_dim), jnp.float32,
            -limit_r, limit_r).astype(jnp.bfloat16)                   # [R, D]

    def forward(self, src, rel, candidate=None):
        if candidate is None:
            return _all_scores(self.entity_emb_t, self.relation_emb, src, rel)
        return _candidate_scores(self.entity_emb_t, self.relation_emb,
                                 src, rel, candidate)

    def score(self, src, rel, candidate=None):
        return self.forward(src, rel, candidate)

    # TODO(synk): BCEWithLogitsLoss / KLDivLoss training losses are host-side
    # training glue, not part of forward(); not ported to the kernel.


# ---------------------------------- main -----------------------------------

if __name__ == "__main__":
    ENTITY_NUM = 128
    RELATION_NUM = 16
    EMBEDDING_DIM = 32
    BATCH = 8
    NEG_TRIPLES = 4

    key = jax.random.PRNGKey(0)
    kp, ks, kr, kt, kn = jax.random.split(key, 5)

    model = JuniorModelPallas(ENTITY_NUM, RELATION_NUM, EMBEDDING_DIM, kp)

    src = jax.random.randint(ks, (BATCH,), 0, ENTITY_NUM, dtype=jnp.int32)
    rel = jax.random.randint(kr, (BATCH,), 0, RELATION_NUM, dtype=jnp.int32)
    target = jax.random.randint(kt, (BATCH, 1), 0, ENTITY_NUM, dtype=jnp.int32)
    negs = jax.random.randint(kn, (BATCH, NEG_TRIPLES), 0, ENTITY_NUM,
                              dtype=jnp.int32)
    candidate = jnp.concatenate([target, negs], axis=1)     # [B, 1+neg]

    # forward with candidate=None: scores against all entities (Pallas kernel)
    full_scores = model.forward(src, rel, None)
    # forward with explicit candidates (as used in JuniorModel.loss)
    cand_scores = model.forward(src, rel, candidate)
    jax.block_until_ready((full_scores, cand_scores))

    # correctness check vs pure-JAX f32 reference (same bf16-quantized weights)
    ent_f32 = model.entity_emb_t.astype(jnp.float32).T               # [N, D]
    rel_f32 = model.relation_emb.astype(jnp.float32)                 # [R, D]
    src_e = jnp.take(ent_f32, src, axis=0)
    rel_e = jnp.take(rel_f32, rel, axis=0)
    ref_full = (src_e * rel_e) @ ent_f32.T
    ref_cand = jnp.take_along_axis(ref_full, candidate, axis=1)

    assert full_scores.shape == (BATCH, ENTITY_NUM)
    assert cand_scores.shape == (BATCH, 1 + NEG_TRIPLES)
    assert jnp.allclose(full_scores, ref_full, atol=2e-2, rtol=2e-2)
    assert jnp.allclose(cand_scores, ref_cand, atol=2e-2, rtol=2e-2)

    print("KERNEL_OK")
</pallas_src>

<mosaic_0001>
module attributes {stable_mosaic.version = 11 : i64} {
  func.func @_distmult_kernel(%arg0: i32, %arg1: i32, %arg2: memref<8x32xf32, #tpu.memory_space<vmem>>, %arg3: memref<8x32xf32, #tpu.memory_space<vmem>>, %arg4: memref<32x128xbf16, #tpu.memory_space<vmem>>, %arg5: memref<8x128xf32, #tpu.memory_space<vmem>>) attributes {dimension_semantics = [#tpu.dimension_semantics<arbitrary>, #tpu.dimension_semantics<parallel>], iteration_bounds = array<i64: 1, 1>, scalar_prefetch = 0 : i64, scratch_operands = 0 : i64, tpu.core_type = #tpu.core_type<tc>, window_params = [{transform_indices = @transform_0, window_bounds = array<i64: 8, 32>}, {transform_indices = @transform_1, window_bounds = array<i64: 8, 32>}, {transform_indices = @transform_2, window_bounds = array<i64: 32, 128>}, {transform_indices = @transform_3, window_bounds = array<i64: 8, 128>}]} {
    %c0 = arith.constant 0 : index
    %c0_0 = arith.constant 0 : index
    %0 = vector.load %arg2[%c0, %c0_0] : memref<8x32xf32, #tpu.memory_space<vmem>>, vector<8x32xf32>
    %c0_1 = arith.constant 0 : index
    %c0_2 = arith.constant 0 : index
    %1 = vector.load %arg3[%c0_1, %c0_2] : memref<8x32xf32, #tpu.memory_space<vmem>>, vector<8x32xf32>
    %2 = arith.mulf %0, %1 : vector<8x32xf32>
    %3 = arith.truncf %2 : vector<8x32xf32> to vector<8x32xbf16>
    %c0_3 = arith.constant 0 : index
    %c0_4 = arith.constant 0 : index
    %4 = vector.load %arg4[%c0_3, %c0_4] : memref<32x128xbf16, #tpu.memory_space<vmem>>, vector<32x128xbf16>
    %cst = arith.constant dense<0.000000e+00> : vector<8x128xf32>
    %5 = tpu.matmul %3, %4, %cst {dimension_numbers = #tpu.dot_dimension_numbers<[1], [0], [0], [1], [0, 0, 1, 1], [], []>} : vector<8x32xbf16>, vector<32x128xbf16>, vector<8x128xf32> -> vector<8x128xf32>
    %c0_5 = arith.constant 0 : index
    %c0_6 = arith.constant 0 : index
    %6 = vector.load %arg5[%c0_5, %c0_6] : memref<8x128xf32, #tpu.memory_space<vmem>>, vector<8x128xf32>
    tpu.vector_store %arg5[%c0_5, %c0_6], %5 {strides = array<i32>} : memref<8x128xf32, #tpu.memory_space<vmem>>, vector<8x128xf32>,
    return
  }
  func.func @transform_0(%arg0: i32, %arg1: i32) -> (i32, i32) {
    %c0_i32 = arith.constant 0 : i32
    %c0_i32_0 = arith.constant 0 : i32
    return %arg0, %c0_i32 : i32, i32
  }
  func.func @transform_1(%arg0: i32, %arg1: i32) -> (i32, i32) {
    %c0_i32 = arith.constant 0 : i32
    %c0_i32_0 = arith.constant 0 : i32
    return %arg0, %c0_i32 : i32, i32
  }
  func.func @transform_2(%arg0: i32, %arg1: i32) -> (i32, i32) {
    %c0_i32 = arith.constant 0 : i32
    %c0_i32_0 = arith.constant 0 : i32
    return %c0_i32, %arg1 : i32, i32
  }
  func.func @transform_3(%arg0: i32, %arg1: i32) -> (i32, i32) {
    %c0_i32 = arith.constant 0 : i32
    return %arg0, %arg1 : i32, i32
  }
}

</mosaic_0001>

<bundles_post_ra>
// kernel: _all_scores.1
= control target key start
LH: loop header
LB: loop body
LE: loop exit
PB: predicated region body
PF: predicated region fallthrough
CT: control target
= control target key end

     0   :  { %v136_v1 = vmov 0.0   ;;  %vm137_vm0 = vmmov 0   ;;  %s174_s0 = inlined_call_operand.vmem [shape: f32[8,32], index: 0, kind: input, shape index: {}]   ;;  %s175_s1 = inlined_call_operand.vmem [shape: f32[8,32], index: 1, kind: input, shape index: {}]   ;;  %s176_s2 = inlined_call_operand.vmem [shape: bf16[32,128], index: 2, kind: input, shape index: {}]   ;;  %s177_s3 = inlined_call_operand.hbm [shape: f32[8,128], index: 3, kind: output, shape index: {}]  }
   0x1   :  { %v112_v0 = vld [vmem:[%s176_s2 + $0x8] sm:$0xff]   ;;  %101 = vmatprep.subr.bf16.mxu0 %v136_v1  ;;  %v113_v2 = vld [vmem:[%s176_s2] sm:$0xff]   ;;  %105 = vmatprep.mubr.msk.bf16.mxu0 %vm137_vm0, %v136_v1 }
   0x2   :  { %102 = vmatpush3.bf16.msra.mxu0 %v112_v0  ;;  %v16_v3 = vld [vmem:[%s174_s0] sm:$0xff] }
   0x3   :  { %v17_v4 = vld [vmem:[%s175_s1] sm:$0xff] }
   0x4   :  { %8 = vsyncpa [#allocation3], 0  ;;  %103 = vmatprep.subr.bf16.mxu0 %v136_v1  ;;  %v18_v5 = vmul.f32 %v17_v4, %v16_v3  ;;  %vm36_vm1 = vcmask 261120   ;;  %s138_s20 = smov [#allocation2]  }
   0x5   :  { %s87_s2 = sshll.u32 %s138_s20, 4  ;;  %s88_s2 = int_to_ptr.vmem [resolvable:$true] %s87_s2 }
   0x6   :  { %v19_v6 = vpack.c.bf16 %v18_v5, %v18_v5  ;;  %104 = vmatpush3.bf16.msra.mxu0 %v113_v2  ;;  %s114_s21 = scalar_lea.vmem %s88_s2, 128  ;;  %p119_p1 = scmp.lt.s32.totalorder %s88_s2, %s88_s2 }
   0x7   :  { %p115_p0 = scmp.ne.s32.totalorder %s88_s2, %s114_s21  ;;  %p120_p2 = scmp.lt.s32.totalorder %s114_s21, %s114_s21 }
   0x9   :  { %106 = vmatmul.mubr.msk.bf16.vlgmr.msra.gmra.mxu0 %vm36_vm1, %v19_v6  ;;  %p121_p3 = por %p120_p2, %p119_p1 }
   0xb   :  { %p122_p4 = pnand %p121_p3, %p115_p0 }
  0xc9   :  { %v74_v7 = vpop.f32.mrf.mxu0 }
  0xca   :  { %80 = vst [vmem:[#allocation2] sm:$0xff] %v74_v7 }
  0xcb   :  { %v107_v8 = vpop.f32.mrf.mxu0 }
  0xcc   :  { %125 = shalt.err (!%p122_p4)
}
  0xcd   :  { %90 = dma.vmem_to_hbm [thread:$0]  %s88_s2, 128, %s177_s3, [#allocation3]   ;;  %v77_v9 = vpop.f32.mrf.mxu0 }
  0xcf   :  { %v108_v10 = vpop.f32.mrf.mxu0 }
  0xd0   :  { %134 = dma.done.wait [#allocation3], 128  }
  0xd1   :  { %135 = vsyncadd [#allocation3], 4294967168 }
  0xd2   :  { %94 = vsyncpa [#allocation3], 1 }

</bundles_post_ra>
